<compile_context>
chip_gen: v6e
topology: v6e:2x2x1
jax: 0.10.0
libtpu: 0.0.40
codegen_flags: <defaults>
</compile_context>

<pallas_src>
import jax
import jax.numpy as jnp
import numpy as np
from jax.experimental import pallas as pl
from jax.experimental.pallas import tpu as pltpu


def mam_kernel(x_ref, wc_ref, bc_ref, wh_ref, bh_ref, ww_ref, bw_ref,
               segh_ref, segw_ref, o_ref):
    X = x_ref[...]                           # (C, H*W) f32, one batch element
    C, HW = X.shape
    H = segh_ref.shape[0]
    W = segw_ref.shape[0]
    inv_hw = 1.0 / (H * W)                   # static reciprocals (trace time)
    inv_cw = 1.0 / (C * W)
    inv_ch = 1.0 / (C * H)

    def gate(avg_row, max_row, wcat_ref, bcat_ref):
        # One MXU matmul per gate: rows = (avg, max), cols = (fc1.T | fc2.T).
        n = wcat_ref.shape[0]
        lhs = jnp.concatenate([avg_row, max_row], axis=0)            # (2, n)
        z = jnp.dot(lhs, wcat_ref[...],
                    preferred_element_type=jnp.float32) + bcat_ref[...]
        z = jnp.maximum(z, 0.0)                                      # (2, 2n)
        return jax.nn.sigmoid(z[0:1, :n] + z[1:2, n:])               # (1, n)

    # ---- channel gate: pool x over the flat spatial axis ----
    avg_c = (jnp.sum(X, axis=1) * inv_hw)[None, :]                   # (1, C)
    max_c = jnp.max(X, axis=1)[None, :]                              # (1, C)
    g_c = gate(avg_c, max_c, wc_ref, bc_ref)                         # (1, C)

    # Only full-tensor temporary: y1 = x * gc (reused for stats and output).
    y1 = X * g_c[0][:, None]                                         # (C, HW)

    # Shared row statistics of y1 (one sublane sum + one sublane max).
    tsum = jnp.sum(y1, axis=0)[None, :]                              # (1, HW)
    tmax = jnp.max(y1, axis=0)[None, :]                              # (1, HW)

    seg_h = segh_ref[...]                                            # (H, HW) 0/1
    seg_w = segw_ref[...]                                            # (W, HW) 0/1
    neg_inf = jnp.float32(-jnp.inf)

    # ---- H gate: pool y1 over (C, W) ----
    avg_h = (jnp.sum(seg_h * tsum, axis=1) * inv_cw)[None, :]                  # (1, H)
    max_h = jnp.max(jnp.where(seg_h > 0.5, tmax, neg_inf), axis=1)[None, :]    # (1, H)
    g_h = gate(avg_h, max_h, wh_ref, bh_ref)                                   # (1, H)
    gh_flat = jnp.sum(seg_h * g_h[0][:, None], axis=0)[None, :]                # (1, HW)

    # ---- W gate: pool y2 = y1 * gh over (C, H); gh > 0 so max commutes ----
    tsum2 = gh_flat * tsum
    tmax2 = gh_flat * tmax
    avg_w = (jnp.sum(seg_w * tsum2, axis=1) * inv_ch)[None, :]                 # (1, W)
    max_w = jnp.max(jnp.where(seg_w > 0.5, tmax2, neg_inf), axis=1)[None, :]   # (1, W)
    g_w = gate(avg_w, max_w, ww_ref, bw_ref)                                   # (1, W)
    gw_flat = jnp.sum(seg_w * g_w[0][:, None], axis=0)[None, :]                # (1, HW)

    # ---- single fused output write: o = x * gc * gh * gw ----
    o_ref[...] = (y1 * (gh_flat * gw_flat)).astype(o_ref.dtype)


def mam_forward(x, params):
    B, C, H, W = x.shape
    HW = H * W
    (w1c, b1c, w2c, b2c, w1h, b1h, w2h, b2h, w1w, b1w, w2w, b2w) = params

    # Pre-transpose + pack fc1/fc2 of each gate (review opt: one matmul/gate).
    def pack(w1, b1, w2, b2):
        return (jnp.concatenate([w1.T, w2.T], axis=1),   # (n, 2n)
                jnp.concatenate([b1, b2], axis=1))        # (1, 2n)

    wc, bc = pack(w1c, b1c, w2c, b2c)
    wh, bh = pack(w1h, b1h, w2h, b2h)
    ww, bw = pack(w1w, b1w, w2w, b2w)

    # 0/1 segment-membership matrices for per-H / per-W pooling on the flat
    # H*W axis (grid-invariant; their copies are elided across grid steps).
    hw_idx = np.arange(HW)
    seg_h = jnp.asarray((hw_idx // W)[None, :] == np.arange(H)[:, None],
                        jnp.float32)                      # (H, HW)
    seg_w = jnp.asarray((hw_idx % W)[None, :] == np.arange(W)[:, None],
                        jnp.float32)                      # (W, HW)

    x_flat = x.reshape(B, C, HW)                          # lane-dense view

    def const_spec(a):
        shape = a.shape
        return pl.BlockSpec(shape, lambda b: (0,) * len(shape))

    out_flat = pl.pallas_call(
        mam_kernel,
        out_shape=jax.ShapeDtypeStruct((B, C, HW), x.dtype),
        grid_spec=pltpu.PrefetchScalarGridSpec(
            num_scalar_prefetch=0,
            grid=(B,),
            in_specs=[
                pl.BlockSpec((None, C, HW), lambda b: (b, 0, 0)),
                const_spec(wc), const_spec(bc),
                const_spec(wh), const_spec(bh),
                const_spec(ww), const_spec(bw),
                const_spec(seg_h), const_spec(seg_w),
            ],
            out_specs=pl.BlockSpec((None, C, HW), lambda b: (b, 0, 0)),
        ),
        compiler_params=pltpu.CompilerParams(
            dimension_semantics=("parallel",),
            vmem_limit_bytes=32 * 1024 * 1024),
    )(x_flat, wc, bc, wh, bh, ww, bw, seg_h, seg_w)

    return out_flat.reshape(B, C, H, W)


def mam_reference(x, params):
    """Pure-JAX reference matching the PyTorch MAM forward."""
    (w1c, b1c, w2c, b2c, w1h, b1h, w2h, b2h, w1w, b1w, w2w, b2w) = params

    def gate(avg, mx, w1, b1, w2, b2):
        a = jnp.maximum(avg @ w1.T + b1, 0.0)
        m = jnp.maximum(mx @ w2.T + b2, 0.0)
        return jax.nn.sigmoid(a + m)

    g_c = gate(x.mean(axis=(2, 3)), x.max(axis=(2, 3)), w1c, b1c, w2c, b2c)
    y1 = x * g_c[:, :, None, None]
    g_h = gate(y1.mean(axis=(1, 3)), y1.max(axis=(1, 3)), w1h, b1h, w2h, b2h)
    y2 = y1 * g_h[:, None, :, None]
    g_w = gate(y2.mean(axis=(1, 2)), y2.max(axis=(1, 2)), w1w, b1w, w2w, b2w)
    return y2 * g_w[:, None, None, :]


def init_params(key, inplane1, inplane2, inplane3):
    """Deterministic init mimicking PyTorch nn.Linear default (uniform +-1/sqrt(in))."""
    params = []
    for n in (inplane1, inplane1, inplane2, inplane2, inplane3, inplane3):
        key, kw, kb = jax.random.split(key, 3)
        bound = 1.0 / np.sqrt(n)
        w = jax.random.uniform(kw, (n, n), jnp.float32, -bound, bound)
        b = jax.random.uniform(kb, (1, n), jnp.float32, -bound, bound)
        params.extend([w, b])
    return tuple(params)


if __name__ == "__main__":
    B, C, H, W = 2, 4, 16, 16  # inplane1=C, inplane2=H, inplane3=W
    key = jax.random.PRNGKey(0)
    kx, kp = jax.random.split(key)
    x = jax.random.normal(kx, (B, C, H, W), jnp.float32)
    params = init_params(kp, C, H, W)

    out = mam_forward(x, params)
    out = jax.block_until_ready(out)

    ref = mam_reference(x, params)
    np.testing.assert_allclose(np.asarray(out), np.asarray(ref),
                               rtol=1e-5, atol=1e-5)
    print("KERNEL_OK")
</pallas_src>

<mosaic_0001>
module attributes {stable_mosaic.version = 11 : i64} {
  func.func @mam_kernel(%arg0: i32, %arg1: memref<1x4x256xf32, #tpu.memory_space<vmem>>, %arg2: memref<4x8xf32, #tpu.memory_space<vmem>>, %arg3: memref<1x8xf32, #tpu.memory_space<vmem>>, %arg4: memref<16x32xf32, #tpu.memory_space<vmem>>, %arg5: memref<1x32xf32, #tpu.memory_space<vmem>>, %arg6: memref<16x32xf32, #tpu.memory_space<vmem>>, %arg7: memref<1x32xf32, #tpu.memory_space<vmem>>, %arg8: memref<16x256xf32, #tpu.memory_space<vmem>>, %arg9: memref<16x256xf32, #tpu.memory_space<vmem>>, %arg10: memref<1x4x256xf32, #tpu.memory_space<vmem>>) attributes {dimension_semantics = [#tpu.dimension_semantics<parallel>], iteration_bounds = array<i64: 2>, scalar_prefetch = 0 : i64, scratch_operands = 0 : i64, tpu.core_type = #tpu.core_type<tc>, window_params = [{transform_indices = @transform_0, window_bounds = array<i64: 1, 4, 256>}, {pipeline_mode = #tpu.pipeline_mode<synchronous>, transform_indices = @transform_1, window_bounds = array<i64: 4, 8>}, {pipeline_mode = #tpu.pipeline_mode<synchronous>, transform_indices = @transform_2, window_bounds = array<i64: 1, 8>}, {pipeline_mode = #tpu.pipeline_mode<synchronous>, transform_indices = @transform_3, window_bounds = array<i64: 16, 32>}, {pipeline_mode = #tpu.pipeline_mode<synchronous>, transform_indices = @transform_4, window_bounds = array<i64: 1, 32>}, {pipeline_mode = #tpu.pipeline_mode<synchronous>, transform_indices = @transform_5, window_bounds = array<i64: 16, 32>}, {pipeline_mode = #tpu.pipeline_mode<synchronous>, transform_indices = @transform_6, window_bounds = array<i64: 1, 32>}, {pipeline_mode = #tpu.pipeline_mode<synchronous>, transform_indices = @transform_7, window_bounds = array<i64: 16, 256>}, {pipeline_mode = #tpu.pipeline_mode<synchronous>, transform_indices = @transform_8, window_bounds = array<i64: 16, 256>}, {transform_indices = @transform_9, window_bounds = array<i64: 1, 4, 256>}]} {
    %c0 = arith.constant 0 : index
    %c0_0 = arith.constant 0 : index
    %c0_1 = arith.constant 0 : index
    %0 = vector.load %arg1[%c0, %c0_0, %c0_1] : memref<1x4x256xf32, #tpu.memory_space<vmem>>, vector<1x4x256xf32>
    %1 = vector.shape_cast %0 : vector<1x4x256xf32> to vector<4x256xf32>
    %cst = arith.constant dense<0.000000e+00> : vector<4xf32>
    %2 = vector.multi_reduction <add>, %1, %cst [1] : vector<4x256xf32> to vector<4xf32>
    %cst_2 = arith.constant 3.906250e-03 : f32
    %3 = vector.broadcast %cst_2 : f32 to vector<4xf32>
    %4 = arith.mulf %2, %3 : vector<4xf32>
    %5 = vector.shape_cast %4 : vector<4xf32> to vector<1x4xf32>
    %cst_3 = arith.constant dense<0xFF800000> : vector<4xf32>
    %6 = vector.multi_reduction <maximumf>, %1, %cst_3 [1] : vector<4x256xf32> to vector<4xf32>
    %7 = vector.shape_cast %6 : vector<4xf32> to vector<1x4xf32>
    %8 = tpu.concatenate %5, %7 in 0 : vector<1x4xf32>, vector<1x4xf32> -> vector<2x4xf32>
    %c0_4 = arith.constant 0 : index
    %c0_5 = arith.constant 0 : index
    %9 = vector.load %arg2[%c0_4, %c0_5] : memref<4x8xf32, #tpu.memory_space<vmem>>, vector<4x8xf32>
    %cst_6 = arith.constant dense<0.000000e+00> : vector<2x8xf32>
    %10 = tpu.matmul %8, %9, %cst_6 {dimension_numbers = #tpu.dot_dimension_numbers<[1], [0], [0], [1], [0, 0, 1, 1], [], []>} : vector<2x4xf32>, vector<4x8xf32>, vector<2x8xf32> -> vector<2x8xf32>
    %c0_7 = arith.constant 0 : index
    %c0_8 = arith.constant 0 : index
    %11 = vector.load %arg3[%c0_7, %c0_8] : memref<1x8xf32, #tpu.memory_space<vmem>>, vector<1x8xf32>
    %12 = vector.broadcast %11 : vector<1x8xf32> to vector<2x8xf32>
    %13 = arith.addf %10, %12 : vector<2x8xf32>
    %cst_9 = arith.constant 0.000000e+00 : f32
    %14 = vector.broadcast %cst_9 : f32 to vector<2x8xf32>
    %15 = arith.maximumf %13, %14 : vector<2x8xf32>
    %16 = vector.extract_strided_slice %15 {offsets = [0, 0], sizes = [1, 4], strides = [1, 1]} : vector<2x8xf32> to vector<1x4xf32>
    %17 = vector.extract_strided_slice %15 {offsets = [1, 4], sizes = [1, 4], strides = [1, 1]} : vector<2x8xf32> to vector<1x4xf32>
    %18 = arith.addf %16, %17 : vector<1x4xf32>
    %19 = arith.negf %18 : vector<1x4xf32>
    %20 = math.exp %19 : vector<1x4xf32>
    %cst_10 = arith.constant 1.000000e+00 : f32
    %21 = vector.broadcast %cst_10 : f32 to vector<1x4xf32>
    %22 = arith.addf %21, %20 : vector<1x4xf32>
    %23 = arith.divf %21, %22 : vector<1x4xf32>
    %24 = vector.shape_cast %23 : vector<1x4xf32> to vector<4xf32>
    %25 = vector.shape_cast %24 : vector<4xf32> to vector<4x1xf32>
    %26 = vector.broadcast %25 : vector<4x1xf32> to vector<4x256xf32>
    %27 = arith.mulf %1, %26 : vector<4x256xf32>
    %cst_11 = arith.constant dense<0.000000e+00> : vector<256xf32>
    %28 = vector.multi_reduction <add>, %27, %cst_11 [0] : vector<4x256xf32> to vector<256xf32>
    %29 = vector.shape_cast %28 : vector<256xf32> to vector<1x256xf32>
    %cst_12 = arith.constant dense<0xFF800000> : vector<256xf32>
    %30 = vector.multi_reduction <maximumf>, %27, %cst_12 [0] : vector<4x256xf32> to vector<256xf32>
    %31 = vector.shape_cast %30 : vector<256xf32> to vector<1x256xf32>
    %c0_13 = arith.constant 0 : index
    %c0_14 = arith.constant 0 : index
    %32 = vector.load %arg8[%c0_13, %c0_14] : memref<16x256xf32, #tpu.memory_space<vmem>>, vector<16x256xf32>
    %c0_15 = arith.constant 0 : index
    %c0_16 = arith.constant 0 : index
    %33 = vector.load %arg9[%c0_15, %c0_16] : memref<16x256xf32, #tpu.memory_space<vmem>>, vector<16x256xf32>
    %34 = vector.broadcast %29 : vector<1x256xf32> to vector<16x256xf32>
    %35 = arith.mulf %32, %34 : vector<16x256xf32>
    %cst_17 = arith.constant dense<0.000000e+00> : vector<16xf32>
    %36 = vector.multi_reduction <add>, %35, %cst_17 [1] : vector<16x256xf32> to vector<16xf32>
    %cst_18 = arith.constant 1.562500e-02 : f32
    %37 = vector.broadcast %cst_18 : f32 to vector<16xf32>
    %38 = arith.mulf %36, %37 : vector<16xf32>
    %39 = vector.shape_cast %38 : vector<16xf32> to vector<1x16xf32>
    %cst_19 = arith.constant 5.000000e-01 : f32
    %40 = vector.broadcast %cst_19 : f32 to vector<16x256xf32>
    %41 = arith.cmpf ogt, %32, %40 : vector<16x256xf32>
    %cst_20 = arith.constant 0xFF800000 : f32
    %42 = vector.shape_cast %31 : vector<1x256xf32> to vector<1x256xf32>
    %43 = vector.broadcast %42 : vector<1x256xf32> to vector<16x256xf32>
    %44 = vector.broadcast %cst_20 : f32 to vector<16x256xf32>
    %45 = arith.select %41, %43, %44 : vector<16x256xi1>, vector<16x256xf32>
    %cst_21 = arith.constant dense<0xFF800000> : vector<16xf32>
    %46 = vector.multi_reduction <maximumf>, %45, %cst_21 [1] : vector<16x256xf32> to vector<16xf32>
    %47 = vector.shape_cast %46 : vector<16xf32> to vector<1x16xf32>
    %48 = tpu.concatenate %39, %47 in 0 : vector<1x16xf32>, vector<1x16xf32> -> vector<2x16xf32>
    %c0_22 = arith.constant 0 : index
    %c0_23 = arith.constant 0 : index
    %49 = vector.load %arg4[%c0_22, %c0_23] : memref<16x32xf32, #tpu.memory_space<vmem>>, vector<16x32xf32>
    %cst_24 = arith.constant dense<0.000000e+00> : vector<2x32xf32>
    %50 = tpu.matmul %48, %49, %cst_24 {dimension_numbers = #tpu.dot_dimension_numbers<[1], [0], [0], [1], [0, 0, 1, 1], [], []>} : vector<2x16xf32>, vector<16x32xf32>, vector<2x32xf32> -> vector<2x32xf32>
    %c0_25 = arith.constant 0 : index
    %c0_26 = arith.constant 0 : index
    %51 = vector.load %arg5[%c0_25, %c0_26] : memref<1x32xf32, #tpu.memory_space<vmem>>, vector<1x32xf32>
    %52 = vector.broadcast %51 : vector<1x32xf32> to vector<2x32xf32>
    %53 = arith.addf %50, %52 : vector<2x32xf32>
    %cst_27 = arith.constant 0.000000e+00 : f32
    %54 = vector.broadcast %cst_27 : f32 to vector<2x32xf32>
    %55 = arith.maximumf %53, %54 : vector<2x32xf32>
    %56 = vector.extract_strided_slice %55 {offsets = [0, 0], sizes = [1, 16], strides = [1, 1]} : vector<2x32xf32> to vector<1x16xf32>
    %57 = vector.extract_strided_slice %55 {offsets = [1, 16], sizes = [1, 16], strides = [1, 1]} : vector<2x32xf32> to vector<1x16xf32>
    %58 = arith.addf %56, %57 : vector<1x16xf32>
    %59 = arith.negf %58 : vector<1x16xf32>
    %60 = math.exp %59 : vector<1x16xf32>
    %cst_28 = arith.constant 1.000000e+00 : f32
    %61 = vector.broadcast %cst_28 : f32 to vector<1x16xf32>
    %62 = arith.addf %61, %60 : vector<1x16xf32>
    %63 = arith.divf %61, %62 : vector<1x16xf32>
    %64 = vector.shape_cast %63 : vector<1x16xf32> to vector<16xf32>
    %65 = vector.shape_cast %64 : vector<16xf32> to vector<16x1xf32>
    %66 = vector.broadcast %65 : vector<16x1xf32> to vector<16x256xf32>
    %67 = arith.mulf %32, %66 : vector<16x256xf32>
    %cst_29 = arith.constant dense<0.000000e+00> : vector<256xf32>
    %68 = vector.multi_reduction <add>, %67, %cst_29 [0] : vector<16x256xf32> to vector<256xf32>
    %69 = vector.shape_cast %68 : vector<256xf32> to vector<1x256xf32>
    %70 = arith.mulf %69, %29 : vector<1x256xf32>
    %71 = arith.mulf %69, %31 : vector<1x256xf32>
    %72 = vector.broadcast %70 : vector<1x256xf32> to vector<16x256xf32>
    %73 = arith.mulf %33, %72 : vector<16x256xf32>
    %cst_30 = arith.constant dense<0.000000e+00> : vector<16xf32>
    %74 = vector.multi_reduction <add>, %73, %cst_30 [1] : vector<16x256xf32> to vector<16xf32>
    %cst_31 = arith.constant 1.562500e-02 : f32
    %75 = vector.broadcast %cst_31 : f32 to vector<16xf32>
    %76 = arith.mulf %74, %75 : vector<16xf32>
    %77 = vector.shape_cast %76 : vector<16xf32> to vector<1x16xf32>
    %cst_32 = arith.constant 5.000000e-01 : f32
    %78 = vector.broadcast %cst_32 : f32 to vector<16x256xf32>
    %79 = arith.cmpf ogt, %33, %78 : vector<16x256xf32>
    %cst_33 = arith.constant 0xFF800000 : f32
    %80 = vector.shape_cast %71 : vector<1x256xf32> to vector<1x256xf32>
    %81 = vector.broadcast %80 : vector<1x256xf32> to vector<16x256xf32>
    %82 = vector.broadcast %cst_33 : f32 to vector<16x256xf32>
    %83 = arith.select %79, %81, %82 : vector<16x256xi1>, vector<16x256xf32>
    %cst_34 = arith.constant dense<0xFF800000> : vector<16xf32>
    %84 = vector.multi_reduction <maximumf>, %83, %cst_34 [1] : vector<16x256xf32> to vector<16xf32>
    %85 = vector.shape_cast %84 : vector<16xf32> to vector<1x16xf32>
    %86 = tpu.concatenate %77, %85 in 0 : vector<1x16xf32>, vector<1x16xf32> -> vector<2x16xf32>
    %c0_35 = arith.constant 0 : index
    %c0_36 = arith.constant 0 : index
    %87 = vector.load %arg6[%c0_35, %c0_36] : memref<16x32xf32, #tpu.memory_space<vmem>>, vector<16x32xf32>
    %cst_37 = arith.constant dense<0.000000e+00> : vector<2x32xf32>
    %88 = tpu.matmul %86, %87, %cst_37 {dimension_numbers = #tpu.dot_dimension_numbers<[1], [0], [0], [1], [0, 0, 1, 1], [], []>} : vector<2x16xf32>, vector<16x32xf32>, vector<2x32xf32> -> vector<2x32xf32>
    %c0_38 = arith.constant 0 : index
    %c0_39 = arith.constant 0 : index
    %89 = vector.load %arg7[%c0_38, %c0_39] : memref<1x32xf32, #tpu.memory_space<vmem>>, vector<1x32xf32>
    %90 = vector.broadcast %89 : vector<1x32xf32> to vector<2x32xf32>
    %91 = arith.addf %88, %90 : vector<2x32xf32>
    %cst_40 = arith.constant 0.000000e+00 : f32
    %92 = vector.broadcast %cst_40 : f32 to vector<2x32xf32>
    %93 = arith.maximumf %91, %92 : vector<2x32xf32>
    %94 = vector.extract_strided_slice %93 {offsets = [0, 0], sizes = [1, 16], strides = [1, 1]} : vector<2x32xf32> to vector<1x16xf32>
    %95 = vector.extract_strided_slice %93 {offsets = [1, 16], sizes = [1, 16], strides = [1, 1]} : vector<2x32xf32> to vector<1x16xf32>
    %96 = arith.addf %94, %95 : vector<1x16xf32>
    %97 = arith.negf %96 : vector<1x16xf32>
    %98 = math.exp %97 : vector<1x16xf32>
    %cst_41 = arith.constant 1.000000e+00 : f32
    %99 = vector.broadcast %cst_41 : f32 to vector<1x16xf32>
    %100 = arith.addf %99, %98 : vector<1x16xf32>
    %101 = arith.divf %99, %100 : vector<1x16xf32>
    %102 = vector.shape_cast %101 : vector<1x16xf32> to vector<16xf32>
    %103 = vector.shape_cast %102 : vector<16xf32> to vector<16x1xf32>
    %104 = vector.broadcast %103 : vector<16x1xf32> to vector<16x256xf32>
    %105 = arith.mulf %33, %104 : vector<16x256xf32>
    %cst_42 = arith.constant dense<0.000000e+00> : vector<256xf32>
    %106 = vector.multi_reduction <add>, %105, %cst_42 [0] : vector<16x256xf32> to vector<256xf32>
    %107 = vector.shape_cast %106 : vector<256xf32> to vector<1x256xf32>
    %108 = arith.mulf %69, %107 : vector<1x256xf32>
    %109 = vector.broadcast %108 : vector<1x256xf32> to vector<4x256xf32>
    %110 = arith.mulf %27, %109 : vector<4x256xf32>
    %c0_43 = arith.constant 0 : index
    %c0_44 = arith.constant 0 : index
    %c0_45 = arith.constant 0 : index
    %111 = vector.load %arg10[%c0_43, %c0_44, %c0_45] : memref<1x4x256xf32, #tpu.memory_space<vmem>>, vector<1x4x256xf32>
    %112 = vector.shape_cast %111 : vector<1x4x256xf32> to vector<4x256xf32>
    %113 = vector.shape_cast %110 : vector<4x256xf32> to vector<1x4x256xf32>
    tpu.vector_store %arg10[%c0_43, %c0_44, %c0_45], %113 {strides = array<i32>} : memref<1x4x256xf32, #tpu.memory_space<vmem>>, vector<1x4x256xf32>,
    return
  }
  func.func @transform_0(%arg0: i32) -> (i32, i32, i32) {
    %c0_i32 = arith.constant 0 : i32
    %c0_i32_0 = arith.constant 0 : i32
    %c0_i32_1 = arith.constant 0 : i32
    return %arg0, %c0_i32, %c0_i32_0 : i32, i32, i32
  }
  func.func @transform_1(%arg0: i32) -> (i32, i32) {
    %c0_i32 = arith.constant 0 : i32
    %c0_i32_0 = arith.constant 0 : i32
    %c0_i32_1 = arith.constant 0 : i32
    return %c0_i32, %c0_i32_0 : i32, i32
  }
  func.func @transform_2(%arg0: i32) -> (i32, i32) {
    %c0_i32 = arith.constant 0 : i32
    %c0_i32_0 = arith.constant 0 : i32
    %c0_i32_1 = arith.constant 0 : i32
    return %c0_i32, %c0_i32_0 : i32, i32
  }
  func.func @transform_3(%arg0: i32) -> (i32, i32) {
    %c0_i32 = arith.constant 0 : i32
    %c0_i32_0 = arith.constant 0 : i32
    %c0_i32_1 = arith.constant 0 : i32
    return %c0_i32, %c0_i32_0 : i32, i32
  }
  func.func @transform_4(%arg0: i32) -> (i32, i32) {
    %c0_i32 = arith.constant 0 : i32
    %c0_i32_0 = arith.constant 0 : i32
    %c0_i32_1 = arith.constant 0 : i32
    return %c0_i32, %c0_i32_0 : i32, i32
  }
  func.func @transform_5(%arg0: i32) -> (i32, i32) {
    %c0_i32 = arith.constant 0 : i32
    %c0_i32_0 = arith.constant 0 : i32
    %c0_i32_1 = arith.constant 0 : i32
    return %c0_i32, %c0_i32_0 : i32, i32
  }
  func.func @transform_6(%arg0: i32) -> (i32, i32) {
    %c0_i32 = arith.constant 0 : i32
    %c0_i32_0 = arith.constant 0 : i32
    %c0_i32_1 = arith.constant 0 : i32
    return %c0_i32, %c0_i32_0 : i32, i32
  }
  func.func @transform_7(%arg0: i32) -> (i32, i32) {
    %c0_i32 = arith.constant 0 : i32
    %c0_i32_0 = arith.constant 0 : i32
    %c0_i32_1 = arith.constant 0 : i32
    return %c0_i32, %c0_i32_0 : i32, i32
  }
  func.func @transform_8(%arg0: i32) -> (i32, i32) {
    %c0_i32 = arith.constant 0 : i32
    %c0_i32_0 = arith.constant 0 : i32
    %c0_i32_1 = arith.constant 0 : i32
    return %c0_i32, %c0_i32_0 : i32, i32
  }
  func.func @transform_9(%arg0: i32) -> (i32, i32, i32) {
    %c0_i32 = arith.constant 0 : i32
    %c0_i32_0 = arith.constant 0 : i32
    %c0_i32_1 = arith.constant 0 : i32
    return %arg0, %c0_i32, %c0_i32_0 : i32, i32, i32
  }
}

</mosaic_0001>

<bundles_post_ra>
// kernel: tpu_custom_call.1
= control target key start
LH: loop header
LB: loop body
LE: loop exit
PB: predicated region body
PF: predicated region fallthrough
CT: control target
= control target key end

     0   :  { %s1946_s0 = inlined_call_operand.hbm [shape: f32[2,4,256], index: 0, kind: input, shape index: {}]   ;;  %s1947_s1 = inlined_call_operand.hbm [shape: f32[4,8], index: 1, kind: input, shape index: {}]   ;;  %s1948_s2 = inlined_call_operand.vmem [shape: f32[1,8], index: 2, kind: input, shape index: {}]   ;;  %s1949_s3 = inlined_call_operand.hbm [shape: f32[16,32], index: 3, kind: input, shape index: {}]   ;;  %s1950_s4 = inlined_call_operand.vmem [shape: f32[1,32], index: 4, kind: input, shape index: {}]   ;;  %s1951_s5 = inlined_call_operand.hbm [shape: f32[16,32], index: 5, kind: input, shape index: {}]   ;;  %s1952_s6 = inlined_call_operand.vmem [shape: f32[1,32], index: 6, kind: input, shape index: {}]   ;;  %s1953_s7 = inlined_call_operand.hbm [shape: f32[16,256], index: 7, kind: input, shape index: {}]   ;;  %s1954_s8 = inlined_call_operand.hbm [shape: f32[16,256], index: 8, kind: input, shape index: {}]   ;;  %s1955_s9 = inlined_call_operand.hbm [shape: f32[2,4,256], index: 9, kind: output, shape index: {}]  }
   0x1   :  { %1960 = sst [smem:[#allocation19_spill]] %s1947_s1 }
   0x2   :  { %1961 = sst [smem:[#allocation20_spill]] %s1949_s3 }
   0x3   :  { %1962 = sst [smem:[#allocation21_spill]] %s1951_s5 }
   0x4   :  { %1963 = sst [smem:[#allocation22_spill]] %s1953_s7 }
   0x5   :  { %14 = vsyncpa [#allocation3], 0 }
   0x6   :  { %16 = vsyncpa [#allocation3 + $0x1], 0 }
   0x7   :  { %17 = vsyncpa [#allocation6], 0 }
   0x8   :  { %18 = vsyncpa [#allocation9], 0 }
   0x9   :  { %19 = vsyncpa [#allocation12], 0 }
   0xa   :  { %20 = vsyncpa [#allocation4], 0 }
   0xb   :  { %22 = vsyncpa [#allocation4 + $0x1], 0  ;;  %s1588_s30 = smov 0   ;;  %s1590_s10 = smov 0  }
   0xc   :  { %s1592_s11 = smov 0   ;;  %s1594_s12 = smov 0  }
   0xd LB: > { %s1522_s13 = smov [#allocation5]   ;;  %s1609_s15 = sadd.s32 4294967295, %s1520_s12   ;;  %s1520_s12 = sphi %s1594_s12, %s1989_s12   ;;  %s1516_s11 = sphi %s1592_s11, %s1988_s11   ;;  %s1512_s10 = sphi %s1590_s10, %s1987_s10   ;;  %s1508_s30 = sphi %s1588_s30, %s1986_s30  }
   0xe   : > { %s266_s14 = sshll.u32 %s1522_s13, 4  ;;  %p1105_p0 = scmp.ge.s32.totalorder %s1520_s12, 1  ;;  %s267_s14 = int_to_ptr.vmem [resolvable:$true] %s266_s14 }
   0xf   : > { %p1956_p1 = scmp.eq.s32.totalorder %s1609_s15, 0  ;;  %p253_p2 = scmp.lt.s32.totalorder %s1520_s12, 3 }
  0x10   : > { %s1523_s17 = smov [#allocation8]   ;;  %s1524_s20 = smov [#allocation7]  }
  0x11   : > { %p1614_p3 = pnand %p1105_p0, %p253_p2  ;;  %s295_s18 = sshll.u32 %s1523_s17, 4  ;;  %s1627_s18 = int_to_ptr.vmem [resolvable:$true] %s295_s18 }
  0x12   : > { %s279_s21 = sshll.u32 %s1524_s20, 4  ;;  %s1297_s23 = scalar_lea.vmem %s267_s14, 64  ;;  %s1629_s21 = int_to_ptr.vmem [resolvable:$true] %s279_s21 }
  0x13   : > { %s1964_s16 = scalar_select %p1614_p3, 1, 0 }
  0x14   : > { %p1191_p5 = pneg %p1614_p3  ;;  %p1298_p8 = scmp.ne.s32.totalorder %s267_s14, %s1297_s23 }
  0x15   : > { %p1305_p11 = scmp.lt.s32.totalorder %s267_s14, %s267_s14  ;;  %p1306_p12 = scmp.lt.s32.totalorder %s1297_s23, %s1297_s23 }
  0x16   : > { %p1623_p6 = pnand %p1191_p5, %p1956_p1 }
  0x17   : > { %p1307_p13 = por %p1306_p12, %p1305_p11 }
  0x18   : > { %p1633_p7 = pneg %p1623_p6 }
  0x1a   : > { %p1300_p9 = pnand %p1298_p8, %p1633_p7 }
  0x1c   : > { %p1301_p10 = pneg %p1300_p9 }
  0x1e   : > { %p1308_p0 = pnand %p1307_p13, %p1301_p10 }
  0x20   : > { %1311 = shalt.err (!%p1308_p0)
}
  0x21   : > { %s1967_s1 = sld [smem:[#allocation19_spill]]  ;;  %s1323_s26 = scalar_lea.vmem %s1627_s18, 256 }
  0x22   : > { %p1324_p2 = scmp.ne.s32.totalorder %s1627_s18, %s1323_s26  ;;  %p1331_p9 = scmp.lt.s32.totalorder %s1627_s18, %s1627_s18 }
  0x23   : > { %p1332_p11 = scmp.lt.s32.totalorder %s1323_s26, %s1323_s26 }
  0x24   : > { %p1326_p5 = pnand %p1324_p2, %p1633_p7 }
  0x25   : > { %p1333_p10 = por %p1332_p11, %p1331_p9 }
  0x26   : > { %p1327_p8 = pneg %p1326_p5 }
  0x27   : > { %1194 = dma.hbm_to_vmem [thread:$0]  (!%p1623_p6), %s1967_s1, 64, %s267_s14, [#allocation6]  }
  0x28   : > { %p1334_p12 = pnand %p1333_p10, %p1327_p8 }
  0x2a   : > { %1337 = shalt.err (!%p1334_p12)
}
  0x2b   : > { %s1525_s27 = smov 128   ;;  %s1526_s28 = smov 8  }
  0x2c   : > { %s1968_s5 = sld [smem:[#allocation21_spill]]  ;;  %s1349_s14 = scalar_lea.vmem %s1629_s21, 256 }
  0x2d   : > { %p1350_p13 = scmp.ne.s32.totalorder %s1629_s21, %s1349_s14  ;;  %p1357_p5 = scmp.lt.s32.totalorder %s1629_s21, %s1629_s21 }
  0x2e   : > { %p1358_p8 = scmp.lt.s32.totalorder %s1349_s14, %s1349_s14 }
  0x2f   : > { %p1352_p0 = pnand %p1350_p13, %p1633_p7 }
  0x30   : > { %p1359_p9 = por %p1358_p8, %p1357_p5 }
  0x31   : > { %p1353_p2 = pneg %p1352_p0 }
  0x32   : > { %1200 = dma.hbm_to_vmem [thread:$0]  (!%p1623_p6), %s1968_s5, 256, %s1627_s18, [#allocation9], %s1525_s27, %s1525_s27, %s1526_s28  }
  0x33   : > { %p1360_p11 = pnand %p1359_p9, %p1353_p2 }
  0x35   : > { %1363 = shalt.err (!%p1360_p11)
}
  0x36   : > { %s1969_s3 = sld [smem:[#allocation20_spill]]  ;;  %s1527_s18 = smov [#allocation10]  }
  0x37   : > { %s311_s23 = sshll.u32 %s1527_s18, 4  ;;  %s312_s23 = int_to_ptr.vmem [resolvable:$true] %s311_s23 }
  0x38   : > { %s1375_s24 = scalar_lea.vmem %s312_s23, 512  ;;  %p1383_p0 = scmp.lt.s32.totalorder %s312_s23, %s312_s23 }
  0x39   : > { %p1376_p10 = scmp.ne.s32.totalorder %s312_s23, %s1375_s24  ;;  %p1384_p5 = scmp.lt.s32.totalorder %s1375_s24, %s1375_s24 }
  0x3b   : > { %p1378_p12 = pnand %p1376_p10, %p1633_p7  ;;  %p1385_p2 = por %p1384_p5, %p1383_p0 }
  0x3c   : > { %1197 = dma.hbm_to_vmem [thread:$0]  (!%p1623_p6), %s1969_s3, 256, %s1629_s21, [#allocation6], %s1525_s27, %s1525_s27, %s1526_s28  }
  0x3d   : > { %p1379_p13 = pneg %p1378_p12 }
  0x3f   : > { %p1386_p8 = pnand %p1385_p2, %p1379_p13 }
  0x41   : > { %1389 = shalt.err (!%p1386_p8)
}
  0x42   : > { %s1528_s25 = smov 256   ;;  %s1529_s26 = smov 16  }
  0x43   : > { %s1970_s7 = sld [smem:[#allocation22_spill]]  ;;  %s1530_s27 = smov [#allocation11]  }
  0x44   : > { %s324_s28 = sshll.u32 %s1530_s27, 4  ;;  %s325_s28 = int_to_ptr.vmem [resolvable:$true] %s324_s28 }
  0x45   : > { %s1401_s13 = scalar_lea.vmem %s325_s28, 512  ;;  %p1409_p12 = scmp.lt.s32.totalorder %s325_s28, %s325_s28 }
  0x46   : > { %p1402_p9 = scmp.ne.s32.totalorder %s325_s28, %s1401_s13  ;;  %p1410_p13 = scmp.lt.s32.totalorder %s1401_s13, %s1401_s13 }
  0x48   : > { %p1404_p11 = pnand %p1402_p9, %p1633_p7  ;;  %p1411_p0 = por %p1410_p13, %p1409_p12 }
  0x49   : > { %1203 = dma.hbm_to_vmem [thread:$0]  (!%p1623_p6), %s1970_s7, 512, %s312_s23, [#allocation9], %s1528_s25, %s1528_s25, %s1529_s26  }
  0x4a   : > { %p1405_p10 = pneg %p1404_p11 }
  0x4c   : > { %p1412_p5 = pnand %p1411_p0, %p1405_p10 }
  0x4e   : > { %1415 = shalt.err (!%p1412_p5)
}
  0x4f   : > { %1206 = dma.hbm_to_vmem [thread:$0]  (!%p1623_p6), %s1954_s8, 512, %s325_s28, [#allocation12], %s1528_s25, %s1528_s25, %s1529_s26  }
  0x50   : > { %s1104_s22 = sadd.s32 4294967294, %s1520_s12   ;;  %s1684_s19 = sadd.s32 1, %s1520_s12  }
  0x51   : > { %s35_s20 = sadd.s32 1, %s1516_s11  ;;  %s32_s18 = ssub.s32 %s1520_s12, %s1684_s19 }
  0x52   : > { %p42_p7 = scmp.ne.s32.totalorder %s1516_s11, %s1512_s10  ;;  %p33_p2 = scmp.eq.s32.totalorder %s32_s18, 0 }
  0x53   : > { %p43_p8 = scmp.eq.s32.totalorder %s1520_s12, 0  ;;  %p48_p9 = scmp.ne.s32.totalorder %s1512_s10, %s1508_s30 }
  0x54   : > { %p240_p11 = scmp.eq.s32.totalorder %s1609_s15, 1  ;;  %p246_p13 = scmp.eq.s32.totalorder %s1104_s22, 1 }
  0x55   : > { %s1696_s23 = scalar_select %p33_p2, %s1516_s11, %s35_s20  }
  0x56   : > { %p44_p10 = por %p43_p8, %p42_p7  ;;  %p1700_p12 = por %p1956_p1, %p48_p9 }
  0x57   : > { %p1704_p6 = por %p240_p11, %p42_p7  ;;  %p1220_p0 = scmp.lt.s32.totalorder %s1520_s12, 2 }
  0x58   : > { %s1971_s24 = scalar_select %p1700_p12, 1, 0 }
  0x59   : > { %s1972_s25 = scalar_select %p1704_p6, 1, 0 }
  0x5a   : > { %s338_s26 = sand.u32 1, %s1516_s11   ;;  %p1710_p5 = por %p246_p13, %p48_p9 }
  0x5b   : > { %s1112_s21 = sshll.u32 %s338_s26, 3  ;;  %s1138_s27 = sshll.u32 %s1520_s12, 7 }
  0x5c   : > { %s1973_s29 = scalar_select %p1710_p5, 1, 0 }
  0x5d   : > { %s1718_s14 = scalar_lea.hbm %s1946_s0, %s1138_s27  ;;  %s342_s17 = scalar_lea.vmem [#allocation2], %s1112_s21 }
  0x5e   : > { %s350_s20 = sshll.u32 %s342_s17, 4  ;;  %p1720_p7 = pnand %p1220_p0, %p44_p10  ;;  %s351_s20 = int_to_ptr.vmem [resolvable:$true] %s350_s20 }
  0x5f   : > { %s339_s18 = scalar_lea.sflag [#allocation3], %s338_s26  ;;  %s1416_s1 = scalar_lea.hbm %s1718_s14, 128 }
  0x60   : > { %p1417_p2 = scmp.ne.s32.totalorder %s1718_s14, %s1416_s1  ;;  %p1418_p8 = pneg %p1720_p7 }
  0x61   : > { %s1421_s13 = scalar_lea.hbm %s1946_s0, 256  ;;  %p1422_p10 = scmp.lt.s32.totalorder %s1718_s14, %s1946_s0 }
  0x62   : > { %p1419_p9 = pnand %p1418_p8, %p1417_p2  ;;  %p1423_p13 = scmp.lt.s32.totalorder %s1421_s13, %s1416_s1 }
  0x64   : > { %p1420_p11 = pneg %p1419_p9  ;;  %p1424_p0 = por %p1423_p13, %p1422_p10 }
  0x66   : > { %p1425_p4 = pnand %p1424_p0, %p1420_p11 }
  0x68   : > { %1428 = shalt.err (!%p1425_p4)
}
  0x69   : > { %s1429_s17 = scalar_lea.vmem %s351_s20, 128  ;;  %s1531_s26 = smov [#allocation2]  }
  0x6a   : > { %p1430_p1 = scmp.ne.s32.totalorder %s351_s20, %s1429_s17  ;;  %s1434_s5 = sshll.u32 %s1531_s26, 4  ;;  %s1435_s5 = int_to_ptr.vmem [resolvable:$false] %s1434_s5 }
  0x6b   : > { %s1436_s7 = scalar_lea.vmem %s1435_s5, 256  ;;  %p1437_p2 = scmp.lt.s32.totalorder %s351_s20, %s1435_s5 }
  0x6c   : > { %p1432_p5 = pnand %p1430_p1, %p1418_p8  ;;  %p1438_p9 = scmp.lt.s32.totalorder %s1436_s7, %s1429_s17 }
  0x6e   : > { %p1433_p6 = pneg %p1432_p5  ;;  %p1439_p12 = por %p1438_p9, %p1437_p2 }
  0x70   : > { %p1440_p3 = pnand %p1439_p12, %p1433_p6 }
  0x72   : > { %1443 = shalt.err (!%p1440_p3)
}
  0x73   : > { %1210 = dma.hbm_to_vmem [thread:$0]  (!%p1720_p7), %s1718_s14, 128, %s351_s20, %s339_s18  }
  0x74   : > { %p1975_p11 = scmp.ne.s32.totalorder %s1964_s16, 0 }
  0x75   : > { %s1741_s1 = sand.u32 (!%p1975_p11), 1, %s1512_s10   ;;  %p1976_p1 = scmp.ne.s32.totalorder (!%p1975_p11), %s1971_s24, 0 }
  0x76   : > { %359 = sbr.rel (%p1975_p11) target bundleno = 2059 (0x80b), region = 56  ;;  %s1116_s3 = sshll.u32 (!%p1975_p11), %s1741_s1, 3 }
  0x77   : > { %s362_s5 = scalar_lea.sflag (!%p1975_p11), [#allocation3], %s1741_s1  ;;  %s365_s7 = scalar_lea.vmem (!%p1975_p11), [#allocation2], %s1116_s3 }
  0x7b   : > { %1487 = dma.done.wait (%p1976_p1), %s362_s5, 128  }
  0x7c   : > { %1489 = vsyncadd (%p1976_p1), %s362_s5, 4294967168  ;;  %p1977_p3 = scmp.eq.s32.totalorder %s1609_s15, 0 }
  0x7e   : > { %1491 = dma.done.wait (%p1977_p3), [#allocation6], 320   ;;  %p1978_p4 = pmov %p1977_p3 }
  0x7f   : > { %p1979_p12 = pmov %p1977_p3 }
  0x80   : > { %1493 = vsyncadd (%p1978_p4), [#allocation6], 4294966976 }
  0x81   : > { %1495 = dma.done.wait (%p1979_p12), [#allocation9], 768   ;;  %p1980_p6 = pmov %p1977_p3 }
  0x82   : > { %p1981_p5 = pmov %p1977_p3 }
  0x83   : > { %1497 = vsyncadd (%p1980_p6), [#allocation9], 4294966528 }
  0x84   : > { %1499 = dma.done.wait (%p1981_p5), [#allocation12], 512   ;;  %p1982_p7 = pmov %p1977_p3 }
  0x85   : > { %vm424_vm0 = vcmask 1043456   ;;  %v420_v0 = vld [vmem:[%s365_s7] sm:$0xff]  ;;  %v452_v8 = vld [vmem:[#allocation5] sm:$0xf]  ;;  %v1532_v9 = vmov 0.0   ;;  %vm1533_vm1 = vmmov 0   ;;  %v437_v10 = vlaneseq }
  0x86   : > { %1501 = vsyncadd (%p1982_p7), [#allocation12], 4294966784  ;;  %v422_v1 = vcombine.high %v420_v0, %v420_v0  ;;  %v425_v2 = vsel %vm424_vm0, %v420_v0, 0.0  ;;  %v431_v4 = vsel %vm424_vm0, %v420_v0, -inf  ;;  %1148 = vmatprep.subr.mxu0 %v1532_v9  ;;  %1150 = vmatprep.mubr.msk.f32.mxu0 %vm1533_vm1, %v1532_v9  ;;  %vm450_vm2 = vcmask 1040384   ;;  %s1534_s14 = smov 124  }
  0x87   : > { %1149 = vmatpush3.msk.msra.mxu0 %vm424_vm0, %v452_v8  ;;  %1153 = vmatprep.subr.mxu1 %v1532_v9  ;;  %v1775_v11 = vand.u32 127, %v437_v10  ;;  %v1777_v12 = vshrl.u32 %v437_v10, 7  ;;  %vm460_vm3 = vcmask 31744   ;;  %v1123_v20 = vld [vmem:[%s1948_s2] ss:$0 sm:$0xff]  ;;  %vm643_vm8 = vcmask 130112  }
  0x88   : > { %v426_v3 = vsel %vm424_vm0, %v422_v1, 0.0  ;;  %v432_v5 = vsel %vm424_vm0, %v422_v1, -inf  ;;  %1157 = vmatprep.mubr.msk.f32.mxu1 %vm1533_vm1, %v1532_v9  ;;  %1160 = vmatprep.subr.mxu0 %v1532_v9  ;;  %v1535_v34 = vmov 839922192   ;;  %v1808_v1 = vld [vmem:[#allocation10 + $0x8] sm:$0xff]  ;;  %vm668_vm9 = vcmask 130048  }
  0x89   : > { %v427_v6 = vadd.f32 %v426_v3, %v425_v2  ;;  %v433_v7 = vmax.f32 %v431_v4, %v432_v5  ;;  %v1781_v14 = vsub.s32 %v1775_v11, %v1777_v12  ;;  %v1792_v31 = vsub.s32 0, %v1777_v12  ;;  %v1810_v3 = vld [vmem:[#allocation10 + $0x10] sm:$0xff]  ;;  %v1812_v4 = vld [vmem:[#allocation10 + $0x18] sm:$0xff]  ;;  %v1814_v5 = vld [vmem:[#allocation10] sm:$0xff]  ;;  %s1536_s18 = smov 112   ;;  %s1139_s13 = sshll.u32 %s1609_s15, 7 }
  0x8a   : > { %v559_v35 = vunpack.c.l.s4 %v1535_v34  ;;  %vm619_vm4 = vcmp.gt.f32.partialorder %v1808_v1, 0.5  ;;  %vm618_vm5 = vcmp.gt.f32.partialorder %v1814_v5, 0.5  ;;  %vm621_vm6 = vcmp.gt.f32.partialorder %v1812_v4, 0.5  ;;  %s419_s21 = scalar_lea.vmem [#allocation13], %s1116_s3  ;;  %s984_s7 = scalar_lea.hbm %s1955_s9, %s1139_s13 }
  0x8b   : > { %428 = vadd.xlane.f32.xlu0 %v427_v6  ;;  %vm620_vm7 = vcmp.gt.f32.partialorder %v1810_v3, 0.5  ;;  %s986_s17 = sshll.u32 %s419_s21, 4  ;;  %s972_s16 = scalar_lea.sflag [#allocation4], %s1741_s1  ;;  %s987_s17 = int_to_ptr.vmem [resolvable:$true] %s986_s17 }
  0x8c   : > { %v560_v36 = vunpack.c.0.s8 %v559_v35  ;;  %s1444_s24 = scalar_lea.vmem %s987_s17, 128  ;;  %p1983_p10 = scmp.ne.s32.totalorder %s1972_s25, 0 }
  0x8d   : > { %p1445_p8 = scmp.ne.s32.totalorder %s987_s17, %s1444_s24 }
  0x8e   : > { %v563_v37 = vsub.s32 %v560_v36, %v1777_v12 }
  0x8f   : > { %434 = vmax.xlane.f32.xlu0 %v433_v7  ;;  %p1446_p13 = pnand %p1445_p8, %p1983_p10 }
  0x91   : > { %p1447_p0 = pneg %p1446_p13 }
 0x114   : > { %v429_v13 = vpop.xlane.xlu0 %428 }
 0x115   : > { %v430_v15 = vmul.f32 0.00390625, %v429_v13 }
 0x117   : > { %v442_v17 = vrot.slane %v430_v15, %v1781_v14 }
 0x118   : > { %v435_v16 = vpop.xlane.xlu0 %434 }
 0x119   : > { %v448_v18 = vrot.slane %v435_v16, %v1781_v14 }
 0x11b   : > { %v451_v19 = vsel %vm450_vm2, %v442_v17, %v448_v18 }
 0x11c   : > { %1151 = vmatmul.mubr.msk.f32.vlgmr.msra.gmra.mxu0 %vm460_vm3, %v451_v19 }
 0x11d   : > { %1164 = vmatprep.mubr.msk.f32.mxu0 %vm1533_vm1, %v1532_v9 }
 0x1dc   : > { %v533_v21 = vpop.f32.mrf.mxu0 }
 0x1dd   : > { %v534_v22 = vadd.f32 %v1123_v20, %v533_v21 }
 0x1de   : > { %v1152_v23 = vpop.f32.mrf.mxu0 }
 0x1df   : > { %v537_v24 = vmax.f32 %v534_v22, 0.0 }
 0x1e1   : > { %v539_v25 = vrot.slane %v537_v24, 1 }
 0x1e3   : > { %540 = vrot.lane.b32.xlu1 %v539_v25, %s1534_s14  ;;  %s1537_s14 = smov [#allocation13]  }
 0x1e4   : > { %s1448_s15 = sshll.u32 %s1537_s14, 4  ;;  %s1449_s15 = int_to_ptr.vmem [resolvable:$false] %s1448_s15 }
 0x1e5   : > { %s1450_s3 = scalar_lea.vmem %s1449_s15, 256  ;;  %p1451_p2 = scmp.lt.s32.totalorder %s987_s17, %s1449_s15 }
 0x1e6   : > { %p1452_p9 = scmp.lt.s32.totalorder %s1450_s3, %s1444_s24 }
 0x1e8   : > { %p1453_p11 = por %p1452_p9, %p1451_p2 }
 0x1ea   : > { %p1454_p1 = pnand %p1453_p11, %p1447_p0 }
 0x255   : > { %v541_v26 = vpop.permute.xlu1 %540 }
 0x256   : > { %v543_v27 = vadd.f32 %v541_v26, %v537_v24  ;;  %v660_v26 = vld [vmem:[#allocation7 + $0x8] sm:$0xff] }
 0x257   : > { %1154 = vmatpush3.msra.mxu1 %v660_v26 }
 0x258   : > { %v1126_v28 = vmul.f32 -1.442695, %v543_v27  ;;  %v659_v27 = vld [vmem:[#allocation7] sm:$0xff]  ;;  %1155 = vmatprep.subr.mxu1 %v1532_v9 }
 0x259   : > { %1156 = vmatpush3.msra.mxu1 %v659_v27 }
 0x25a   : > { %1274 = vpow2.f32 %v1126_v28  ;;  %v638_v28 = vadd.s32 4294967288, %v1775_v11 }
 0x267   : > { %v1275_v29 = vpop.eup %1274 }
 0x268   : > { %v547_v30 = vadd.f32 1.0, %v1275_v29 }
 0x26a   : > { %1276 = vrcp.f32 %v547_v30 }
 0x277   : > { %v1277_v32 = vpop.eup %1276 }
 0x278   : > { %v553_v33 = vrot.slane %v1277_v32, %v1792_v31  ;;  %v1841_v32 = vsub.s32 %v638_v28, %v1777_v12 }
 0x27a   : > { %555 = vbcast.lane.b32.xlu1 %v553_v33, 256 }
 0x2ec   : > { %v556_v38 = vpop.permute.xlu1 %555 }
 0x2ed   : > { %v564_v39 = vrot.slane %v556_v38, %v563_v37 }
 0x2ef   : > { %v1796_v40 = vmul.f32 %v564_v39, %v420_v0 }
 0x2f1   : > { %v568_v41 = vcombine.high %v1796_v40, %v1796_v40  ;;  %v570_v42 = vsel %vm424_vm0, %v1796_v40, 0.0  ;;  %v584_v43 = vsel %vm424_vm0, %v1796_v40, -inf }
 0x2f2   : > { %v571_v44 = vrot.slane %v570_v42, 4  ;;  %v585_v45 = vrot.slane %v584_v43, 4 }
 0x2f3   : > { %v577_v46 = vsel %vm424_vm0, %v568_v41, 0.0  ;;  %v591_v47 = vsel %vm424_vm0, %v568_v41, -inf }
 0x2f4   : > { %v572_v48 = vadd.f32 %v571_v44, %v570_v42  ;;  %v578_v49 = vrot.slane %v577_v46, 4  ;;  %v586_v50 = vmax.f32 %v584_v43, %v585_v45  ;;  %v592_v51 = vrot.slane %v591_v47, 4  ;;  %v1127_v43 = vld [vmem:[%s1950_s4] ss:$0 sm:$0xff] }
 0x2f6   : > { %v573_v52 = vrot.slane %v572_v48, 2  ;;  %v579_v53 = vadd.f32 %v578_v49, %v577_v46  ;;  %v587_v54 = vrot.slane %v586_v50, 2  ;;  %v593_v55 = vmax.f32 %v591_v47, %v592_v51 }
 0x2f8   : > { %v574_v56 = vadd.f32 %v573_v52, %v572_v48  ;;  %v580_v57 = vrot.slane %v579_v53, 2  ;;  %v594_v58 = vrot.slane %v593_v55, 2  ;;  %v588_v59 = vmax.f32 %v586_v50, %v587_v54 }
 0x2fa   : > { %v575_v60 = vrot.slane %v574_v56, 1  ;;  %v581_v61 = vadd.f32 %v580_v57, %v579_v53  ;;  %v595_v62 = vmax.f32 %v593_v55, %v594_v58  ;;  %v589_v6 = vrot.slane %v588_v59, 1 }
 0x2fc   : > { %v1806_v63 = vadd.f32 %v575_v60, %v574_v56  ;;  %v582_v0 = vrot.slane %v581_v61, 1  ;;  %v596_v2 = vrot.slane %v595_v62, 1  ;;  %v1829_v17 = vmax.f32 %v588_v59, %v589_v6 }
 0x2fe   : > { %v1816_v7 = vadd.f32 %v582_v0, %v581_v61  ;;  %v1818_v8 = vmax.f32 %v595_v62, %v596_v2  ;;  %v608_v10 = vmul.f32 %v1810_v3, %v1806_v63  ;;  %v606_v15 = vmul.f32 %v1814_v5, %v1806_v63 }
 0x2ff   : > { %v622_v21 = vsel %vm618_vm5, %v1829_v17, -inf  ;;  %v624_v24 = vsel %vm620_vm7, %v1829_v17, -inf }
 0x300   : > { %v609_v13 = vmul.f32 %v1812_v4, %v1816_v7  ;;  %v607_v16 = vmul.f32 %v1808_v1, %v1816_v7  ;;  %v623_v20 = vsel %vm619_vm4, %v1818_v8, -inf  ;;  %v625_v23 = vsel %vm621_vm6, %v1818_v8, -inf }
 0x301   : > { %v626_v22 = vmax.f32 %v622_v21, %v623_v20  ;;  %v629_v25 = vmax.f32 %v624_v24, %v625_v23  ;;  %v1870_v23 = vld [vmem:[#allocation11 + $0x18] sm:$0xff] }
 0x302   : > { %v613_v18 = vadd.f32 %v609_v13, %v608_v10  ;;  %v610_v19 = vadd.f32 %v607_v16, %v606_v15  ;;  %vm803_vm13 = vcmp.gt.f32.partialorder %v1870_v23, 0.5 }
 0x304   : > { %614 = vadd.xlane.f32.xlu1 %v613_v18  ;;  %611 = vadd.xlane.f32.xlu0 %v610_v19 }
 0x308   : > { %627 = vmax.xlane.f32.xlu0 %v626_v22 }
 0x30c   : > { %630 = vmax.xlane.f32.xlu0 %v629_v25 }
 0x38d   : > { %v615_v29 = vpop.xlane.xlu1 %614  ;;  %v612_v30 = vpop.xlane.xlu0 %611 }
 0x38e   : > { %v617_v33 = vmul.f32 0.015625, %v615_v29  ;;  %v616_v34 = vmul.f32 0.015625, %v612_v30 }
 0x390   : > { %v642_v36 = vrot.slane %v617_v33, %v1841_v32  ;;  %v637_v37 = vrot.slane %v616_v34, %v1781_v14 }
 0x391   : > { %v628_v35 = vpop.xlane.xlu0 %627 }
 0x392   : > { %v651_v39 = vrot.slane %v628_v35, %v1781_v14  ;;  %v644_v42 = vsel %vm643_vm8, %v642_v36, %v637_v37 }
 0x395   : > { %v631_v38 = vpop.xlane.xlu0 %630 }
 0x396   : > { %v655_v41 = vrot.slane %v631_v38, %v1841_v32  ;;  %v840_v38 = vld [vmem:[#allocation8 + $0x8] sm:$0xff] }
 0x397   : > { %1161 = vmatpush3.msra.mxu0 %v840_v38 }
 0x398   : > { %v656_v11 = vsel %vm643_vm8, %v655_v41, %v651_v39  ;;  %v839_v39 = vld [vmem:[#allocation8] sm:$0xff]  ;;  %1162 = vmatprep.subr.mxu0 %v1532_v9 }
 0x399   : > { %v658_v12 = vsel %vm450_vm2, %v644_v42, %v656_v11  ;;  %1163 = vmatpush3.msra.mxu0 %v839_v39 }
 0x39a   : > { %1158 = vmatmul.mubr.msk.f32.vlgmr.msra.gmra.mxu1 %vm668_vm9, %v658_v12 }
 0x45a   : > { %v738_v44 = vpop.f32.mrf.mxu1 }
 0x45b   : > { %v739_v45 = vadd.f32 %v1127_v43, %v738_v44 }
 0x45c   : > { %v1159_v46 = vpop.f32.mrf.mxu1 }
 0x45d   : > { %v742_v47 = vmax.f32 %v739_v45, 0.0 }
 0x45f   : > { %v744_v48 = vrot.slane %v742_v47, 1 }
 0x461   : > { %745 = vrot.lane.b32.xlu0 %v744_v48, %s1536_s18 }
 0x4d3   : > { %v746_v49 = vpop.permute.xlu0 %745 }
 0x4d4   : > { %v748_v50 = vadd.f32 %v746_v49, %v742_v47 }
 0x4d6   : > { %v1129_v51 = vmul.f32 -1.442695, %v748_v50 }
 0x4d8   : > { %1278 = vpow2.f32 %v1129_v51  ;;  %v1130_v51 = vld [vmem:[%s1952_s6] ss:$0 sm:$0xff] }
 0x4e5   : > { %v1279_v52 = vpop.eup %1278 }
 0x4e6   : > { %v752_v53 = vadd.f32 1.0, %v1279_v52 }
 0x4e8   : > { %1280 = vrcp.f32 %v752_v53 }
 0x4f5   : > { %v1281_v54 = vpop.eup %1280 }
 0x4f6   : > { %v758_v55 = vrot.slane %v1281_v54, %v1792_v31 }
 0x4f8   : > { %764 = vbcast.lane.b32.xlu1 %v758_v55, 264  ;;  %760 = vbcast.lane.b32.xlu0 %v758_v55, 256 }
 0x56a   : > { %v765_v56 = vpop.permute.xlu1 %764  ;;  %v761_v57 = vpop.permute.xlu0 %760 }
 0x56b   : > { %v768_v58 = vmul.f32 %v765_v56, %v1810_v3  ;;  %v769_v59 = vmul.f32 %v765_v56, %v1812_v4  ;;  %v766_v60 = vmul.f32 %v761_v57, %v1814_v5  ;;  %v767_v61 = vmul.f32 %v761_v57, %v1808_v1  ;;  %v1864_v4 = vld [vmem:[#allocation11] sm:$0xff]  ;;  %v1866_v5 = vld [vmem:[#allocation11 + $0x8] sm:$0xff]  ;;  %v1868_v1 = vld [vmem:[#allocation11 + $0x10] sm:$0xff] }
 0x56c   : > { %vm800_vm10 = vcmp.gt.f32.partialorder %v1864_v4, 0.5  ;;  %vm801_vm11 = vcmp.gt.f32.partialorder %v1866_v5, 0.5  ;;  %vm802_vm12 = vcmp.gt.f32.partialorder %v1868_v1, 0.5 }
 0x56d   : > { %v770_v62 = vadd.f32 %v768_v58, %v766_v60  ;;  %v777_v0 = vadd.f32 %v769_v59, %v767_v61 }
 0x56f   : > { %v771_v2 = vrot.slane %v770_v62, 4  ;;  %v778_v6 = vrot.slane %v777_v0, 4 }
 0x571   : > { %v772_v10 = vadd.f32 %v771_v2, %v770_v62  ;;  %v779_v13 = vadd.f32 %v778_v6, %v777_v0 }
 0x573   : > { %v773_v15 = vrot.slane %v772_v10, 2  ;;  %v780_v16 = vrot.slane %v779_v13, 2 }
 0x575   : > { %v774_v18 = vadd.f32 %v773_v15, %v772_v10  ;;  %v781_v19 = vadd.f32 %v780_v16, %v779_v13 }
 0x577   : > { %v775_v20 = vrot.slane %v774_v18, 1  ;;  %v782_v21 = vrot.slane %v781_v19, 1 }
 0x579   : > { %v1860_v22 = vadd.f32 %v775_v20, %v774_v18  ;;  %v1862_v3 = vadd.f32 %v782_v21, %v781_v19 }
 0x57b   : > { %v784_v24 = vmul.f32 %v1860_v22, %v1806_v63  ;;  %v785_v25 = vmul.f32 %v1862_v3, %v1816_v7  ;;  %v786_v26 = vmul.f32 %v1860_v22, %v1829_v17  ;;  %v787_v27 = vmul.f32 %v1862_v3, %v1818_v8 }
 0x57d   : > { %v790_v28 = vmul.f32 %v784_v24, %v1868_v1  ;;  %v791_v29 = vmul.f32 %v785_v25, %v1870_v23  ;;  %v788_v30 = vmul.f32 %v784_v24, %v1864_v4  ;;  %v789_v63 = vmul.f32 %v785_v25, %v1866_v5 }
 0x57e   : > { %v804_v34 = vsel %vm800_vm10, %v786_v26, -inf  ;;  %v805_v35 = vsel %vm801_vm11, %v787_v27, -inf  ;;  %v806_v17 = vsel %vm802_vm12, %v786_v26, -inf  ;;  %v807_v36 = vsel %vm803_vm13, %v787_v27, -inf }
 0x57f   : > { %v795_v33 = vadd.f32 %v791_v29, %v790_v28  ;;  %v792_v7 = vadd.f32 %v789_v63, %v788_v30  ;;  %v808_v8 = vmax.f32 %v804_v34, %v805_v35  ;;  %v811_v37 = vmax.f32 %v806_v17, %v807_v36 }
 0x581   : > { %796 = vadd.xlane.f32.xlu1 %v795_v33  ;;  %793 = vadd.xlane.f32.xlu0 %v792_v7 }
 0x585   : > { %809 = vmax.xlane.f32.xlu0 %v808_v8 }
 0x589   : > { %812 = vmax.xlane.f32.xlu0 %v811_v37 }
 0x60a   : > { %v797_v41 = vpop.xlane.xlu1 %796  ;;  %v794_v11 = vpop.xlane.xlu0 %793 }
 0x60b   : > { %v799_v42 = vmul.f32 0.015625, %v797_v41  ;;  %v798_v12 = vmul.f32 0.015625, %v794_v11 }
 0x60d   : > { %v823_v44 = vrot.slane %v799_v42, %v1841_v32  ;;  %v819_v45 = vrot.slane %v798_v12, %v1781_v14 }
 0x60e   : > { %v810_v43 = vpop.xlane.xlu0 %809 }
 0x60f   : > { %v831_v47 = vrot.slane %v810_v43, %v1781_v14  ;;  %v824_v49 = vsel %vm643_vm8, %v823_v44, %v819_v45 }
 0x612   : > { %v813_v46 = vpop.xlane.xlu0 %812 }
 0x613   : > { %v835_v48 = vrot.slane %v813_v46, %v1841_v32 }
 0x615   : > { %v836_v50 = vsel %vm643_vm8, %v835_v48, %v831_v47 }
 0x616   : > { %v838_v9 = vsel %vm450_vm2, %v824_v49, %v836_v50 }
 0x617   : > { %1165 = vmatmul.mubr.msk.f32.vlgmr.msra.gmra.mxu0 %vm668_vm9, %v838_v9 }
 0x6d7   : > { %v917_v52 = vpop.f32.mrf.mxu0 }
 0x6d8   : > { %v918_v53 = vadd.f32 %v1130_v51, %v917_v52 }
 0x6d9   : > { %v1166_v54 = vpop.f32.mrf.mxu0 }
 0x6da   : > { %v921_v55 = vmax.f32 %v918_v53, 0.0 }
 0x6dc   : > { %v923_v56 = vrot.slane %v921_v55, 1 }
 0x6de   : > { %924 = vrot.lane.b32.xlu0 %v923_v56, %s1536_s18 }
 0x750   : > { %v925_v14 = vpop.permute.xlu0 %924 }
 0x751   : > { %v927_v32 = vadd.f32 %v925_v14, %v921_v55 }
 0x753   : > { %v1132_v57 = vmul.f32 -1.442695, %v927_v32 }
 0x755   : > { %1282 = vpow2.f32 %v1132_v57 }
 0x762   : > { %v1283_v58 = vpop.eup %1282 }
 0x763   : > { %v931_v59 = vadd.f32 1.0, %v1283_v58 }
 0x765   : > { %1284 = vrcp.f32 %v931_v59 }
 0x772   : > { %v1285_v60 = vpop.eup %1284 }
 0x773   : > { %v937_v61 = vrot.slane %v1285_v60, %v1792_v31 }
 0x775   : > { %943 = vbcast.lane.b32.xlu0 %v937_v61, 264  ;;  %939 = vbcast.lane.b32.xlu1 %v937_v61, 256 }
 0x7e7   : > { %v944_v62 = vpop.permute.xlu0 %943  ;;  %v940_v0 = vpop.permute.xlu1 %939 }
 0x7e8   : > { %v947_v2 = vmul.f32 %v944_v62, %v1868_v1  ;;  %v948_v6 = vmul.f32 %v944_v62, %v1870_v23  ;;  %v945_v10 = vmul.f32 %v940_v0, %v1864_v4  ;;  %v946_v13 = vmul.f32 %v940_v0, %v1866_v5 }
 0x7ea   : > { %v949_v15 = vadd.f32 %v947_v2, %v945_v10  ;;  %v956_v16 = vadd.f32 %v948_v6, %v946_v13 }
 0x7ec   : > { %v950_v18 = vrot.slane %v949_v15, 4  ;;  %v957_v19 = vrot.slane %v956_v16, 4 }
 0x7ee   : > { %v951_v20 = vadd.f32 %v950_v18, %v949_v15  ;;  %v958_v31 = vadd.f32 %v957_v19, %v956_v16 }
 0x7f0   : > { %v952_v21 = vrot.slane %v951_v20, 2  ;;  %v959_v24 = vrot.slane %v958_v31, 2 }
 0x7f2   : > { %v953_v25 = vadd.f32 %v952_v21, %v951_v20  ;;  %v960_v26 = vadd.f32 %v959_v24, %v958_v31 }
 0x7f4   : > { %v954_v1 = vrot.slane %v953_v25, 1  ;;  %v961_v27 = vrot.slane %v960_v26, 1 }
 0x7f6   : > { %v955_v23 = vadd.f32 %v954_v1, %v953_v25  ;;  %v962_v4 = vadd.f32 %v961_v27, %v960_v26 }
 0x7f8   : > { %v963_v5 = vmul.f32 %v955_v23, %v1860_v22  ;;  %v964_v28 = vmul.f32 %v962_v4, %v1862_v3 }
 0x7fa   : > { %v967_v29 = vcombine.low %v963_v5, %v964_v28 }
 0x7fc   : > { %v969_v30 = vmul.f32 %v967_v29, %v1796_v40 }
 0x7fe   : > { %970 = vst [vmem:[%s419_s21] sm:$0xff] %v969_v30 }
 0x7ff   : > { %1457 = shalt.err (!%p1454_p1)
}
 0x800   : > { %s1458_s20 = scalar_lea.hbm %s984_s7, 128  ;;  %s1462_s18 = scalar_lea.hbm %s1955_s9, 256 }
 0x801   : > { %p1459_p3 = scmp.ne.s32.totalorder %s984_s7, %s1458_s20  ;;  %p1463_p6 = scmp.lt.s32.totalorder %s984_s7, %s1955_s9 }
 0x802   : > { %p1464_p5 = scmp.lt.s32.totalorder %s1462_s18, %s1458_s20 }
 0x803   : > { %p1460_p4 = pnand %p1459_p3, %p1983_p10 }
 0x804   : > { %p1465_p7 = por %p1464_p5, %p1463_p6 }
 0x805   : > { %p1461_p12 = pneg %p1460_p4 }
 0x807   : > { %p1466_p8 = pnand %p1465_p7, %p1461_p12 }
 0x809   : > { %1469 = shalt.err (!%p1466_p8)
}
 0x80a   : > { %1189 = dma.vmem_to_hbm [thread:$0]  (%p1983_p10), %s987_s17, 128, %s984_s7, %s972_s16  }
 0x80b PF: > { %s998_s13 = sand.u32 1, %s1508_s30   ;;  %p1984_p13 = scmp.ne.s32.totalorder %s1973_s29, 0 }
 0x80c   : > { %p1985_p0 = scmp.ge.s32.totalorder %s1520_s12, 2  ;;  %s999_s21 = scalar_lea.sflag [#allocation4], %s998_s13 }
 0x80e   : > { %p1212_p2 = pnand %p1985_p0, %p1984_p13 }
 0x810   : > { %p1213_p9 = pneg %p1212_p2 }
 0x812   : > { %1503 = dma.done.wait (%p1213_p9), %s999_s21, 128  }
 0x813   : > { %1505 = vsyncadd (%p1213_p9), %s999_s21, 4294967168  ;;  %p25_p11 = scmp.ge.s32.totalorder %s1684_s19, 4   ;;  %s1986_s30 = smov %s1512_s10 }
 0x814   : > { %s1987_s10 = smov %s1516_s11  ;;  %s1988_s11 = smov %s1696_s23 }
 0x815   : > { %s1989_s12 = smov %s1684_s19  ;;  %27 = sbr.rel (!%p25_p11) target bundleno = 13 (0xd), region = 121 }
 0x81a   :  { %1004 = vsyncpa [#allocation3], 1 }
 0x81b   :  { %1006 = vsyncpa [#allocation3 + $0x1], 1 }
 0x81c   :  { %1007 = vsyncpa [#allocation6], 1 }
 0x81d   :  { %1008 = vsyncpa [#allocation9], 1 }
 0x81e   :  { %1009 = vsyncpa [#allocation12], 1 }
 0x81f   :  { %1010 = vsyncpa [#allocation4], 1 }
 0x820   :  { %1012 = vsyncpa [#allocation4 + $0x1], 1 }

</bundles_post_ra>
